<compile_context>
chip_gen: v5e
topology: v5e:2x2
jax: 0.10.0
libtpu: 0.0.40
codegen_flags: <defaults>
</compile_context>

<pallas_src>
import numpy as np
import jax
import jax.numpy as jnp
from jax.experimental import pallas as pl
from jax.experimental.pallas import tpu as pltpu


LANE = 128           # pad feature dims to the lane width -> lane-dense stores
SUBLANE = 8          # pad row counts to the sublane width
MAX_ROW_BLOCK = 512  # row tile (multiple of 128) when inputs get large
# bf16 MXU operands roughly double matmul throughput on v6e/v7x and halve
# weight DMA bytes at realistic widths (r3d_18's 512 features); keep f32 here
# for bit-accuracy at these toy sizes and for v5e's f32-only VPU path.
DOT_DTYPE = jnp.float32


def _round_up(n, m):
    return ((n + m - 1) // m) * m


# ----------------------------- Pallas kernel -----------------------------

def _make_chain_kernel(n_layers, relu_flags, reduce_rows):
    """Kernel computing a Linear(+ReLU) chain over one row-block.

    If reduce_rows: also left-multiplies by an averaging matrix (per-item row
    means) and accumulates into a resident output block across the grid axis.
    """
    def kernel(*refs):
        if reduce_rows:
            x_ref, avg_ref = refs[0], refs[1]
            wb = refs[2:-1]
        else:
            x_ref = refs[0]
            wb = refs[1:-1]
        out_ref = refs[-1]

        x = x_ref[...].astype(jnp.float32)
        for li in range(n_layers):
            w = wb[2 * li][...]
            b = wb[2 * li + 1][...]
            x = jnp.dot(x.astype(DOT_DTYPE), w.astype(DOT_DTYPE),
                        preferred_element_type=jnp.float32)
            x = x + b.astype(jnp.float32)
            if relu_flags[li]:
                x = jnp.maximum(x, 0.0)

        if reduce_rows:
            # Per-item mean of this row block via one small MXU pass; keep the
            # averaging matmul in f32 for mean precision.
            part = jnp.dot(avg_ref[...], x, preferred_element_type=jnp.float32)

            @pl.when(pl.program_id(0) == 0)
            def _():
                out_ref[...] = jnp.zeros_like(out_ref)

            out_ref[...] += part
        else:
            out_ref[...] = x.astype(out_ref.dtype)

    return kernel


def fused_mlp_chain(x, padded_params, relu_flags, out_dim, avg=None):
    """Run the fused Linear(+ReLU) chain for one modality in ONE pallas_call.

    x:             [rows, din] (unpadded) — all list items concatenated.
    padded_params: list of (W [Kp, Np], b [1, Np]) zero-padded to LANE multiples.
    out_dim:       true output feature width (sliced back from Np).
    avg:           optional [n_items, rows] row-averaging matrix; if given the
                   result is avg @ chain(x) -> [n_items, out_dim] (IMU means).
    """
    rows, din = x.shape
    din_pad = padded_params[0][0].shape[0]
    dout_pad = padded_params[-1][0].shape[1]

    # Row tiling: one full-extent block for small inputs, 512-row "parallel"
    # tiles (sharded across TensorCores on v7x) for large ones.
    if rows <= MAX_ROW_BLOCK:
        rows_pad = _round_up(rows, SUBLANE)
        block_rows = rows_pad
    else:
        rows_pad = _round_up(rows, MAX_ROW_BLOCK)
        block_rows = MAX_ROW_BLOCK
    grid = (rows_pad // block_rows,)

    x_pad = jnp.zeros((rows_pad, din_pad), jnp.float32)
    x_pad = x_pad.at[:rows, :din].set(x.astype(jnp.float32))

    flat = []
    for w, b in padded_params:
        flat.extend([w, b])

    inputs = [x_pad]
    in_specs = [pl.BlockSpec((block_rows, din_pad), lambda i: (i, 0))]

    reduce_rows = avg is not None
    if reduce_rows:
        n_out = avg.shape[0]
        n_pad = _round_up(n_out, SUBLANE)
        avg_pad = jnp.zeros((n_pad, rows_pad), jnp.float32)
        avg_pad = avg_pad.at[:n_out, :rows].set(avg.astype(jnp.float32))
        inputs.append(avg_pad)
        in_specs.append(pl.BlockSpec((n_pad, block_rows), lambda i: (0, i)))

    # Weights/biases: full-extent blocks, bound once per call (VMEM-resident
    # across the whole row grid — no per-item re-DMA).
    for a in flat:
        in_specs.append(pl.BlockSpec(a.shape, lambda i: (0, 0)))
    inputs.extend(flat)

    if reduce_rows:
        out_rows_pad = n_pad
        out_specs = pl.BlockSpec((n_pad, dout_pad), lambda i: (0, 0))
        semantics = ("arbitrary",)   # output block accumulated across grid
        true_rows = n_out
    else:
        out_rows_pad = rows_pad
        out_specs = pl.BlockSpec((block_rows, dout_pad), lambda i: (i, 0))
        semantics = ("parallel",)
        true_rows = rows

    kernel = _make_chain_kernel(len(padded_params), tuple(relu_flags),
                                reduce_rows)
    out = pl.pallas_call(
        kernel,
        out_shape=jax.ShapeDtypeStruct((out_rows_pad, dout_pad), jnp.float32),
        grid=grid,
        in_specs=in_specs,
        out_specs=out_specs,
        compiler_params=pltpu.CompilerParams(dimension_semantics=semantics),
    )(*inputs)
    return out[:true_rows, :out_dim]


# --------------------------- parameter helpers ----------------------------

def _init_linear(key, din, dout):
    kw, kb = jax.random.split(key)
    w = jax.random.normal(kw, (din, dout), jnp.float32) * 0.02
    b = jax.random.normal(kb, (1, dout), jnp.float32) * 0.02
    return w, b


def _pad_linear(w, b):
    """Zero-pad W/b so matmul K and N are multiples of 128 (lane-dense).
    Zero padding is exact: padded activation columns stay 0 through ReLU."""
    din, dout = w.shape
    dp, op = _round_up(din, LANE), _round_up(dout, LANE)
    wp = jnp.zeros((dp, op), w.dtype).at[:din, :dout].set(w)
    bp = jnp.zeros((1, op), b.dtype).at[:, :dout].set(b)
    return wp, bp


def _init_mlp(key, input_dim, hidden_dim, output_dim, num_layers):
    """Mirrors MLP: num_layers x (Linear + ReLU), then final Linear."""
    params, relus = [], []
    keys = jax.random.split(key, num_layers + 1)
    d = input_dim
    for i in range(num_layers):
        params.append(_init_linear(keys[i], d, hidden_dim))
        relus.append(True)
        d = hidden_dim
    params.append(_init_linear(keys[-1], hidden_dim, output_dim))
    relus.append(False)
    return params, relus


def _init_shared_mlp(key, input_dim, hidden_dim, output_dim):
    """Mirrors SharedMLP: Linear -> ReLU -> Linear."""
    k1, k2 = jax.random.split(key)
    params = [_init_linear(k1, input_dim, hidden_dim),
              _init_linear(k2, hidden_dim, output_dim)]
    return params, [True, False]


# ------------------------------ CLIP module -------------------------------

class CLIPPallas:
    def __init__(self, key, *, embed_dim, image_feat_dim, mlp_width,
                 skel_feat_dim, mlp_hidden_dim, mlp_layers, step):
        ks = jax.random.split(key, 8)
        self.step = step
        # shared_mlp is a single module reused for every modality (the
        # shared_mlp_vision/imu/skeleton copies in torch are never used in
        # forward, so they are not instantiated here).
        self.shared_p, self.shared_r = _init_shared_mlp(
            ks[0], embed_dim, mlp_hidden_dim, embed_dim)
        self.mlp_image_p, self.mlp_image_r = _init_mlp(
            ks[1], image_feat_dim, mlp_hidden_dim, embed_dim, mlp_layers)
        self.mlp_imu_p, self.mlp_imu_r = _init_mlp(
            ks[2], mlp_width, mlp_hidden_dim, embed_dim, mlp_layers)
        self.mlp_skel_p, self.mlp_skel_r = _init_mlp(
            ks[3], skel_feat_dim, mlp_hidden_dim, embed_dim, mlp_layers)
        self.image_proj = _init_linear(ks[4], embed_dim, embed_dim)
        self.imu_proj = _init_linear(ks[5], embed_dim, embed_dim)
        self.skel_proj = _init_linear(ks[6], embed_dim, embed_dim)
        self.logit_scale = jnp.asarray(np.log(1.0 / 0.07), jnp.float32)
        # TODO(synk): frozen pretrained encoders (r3d_18 / LIMU-BERT / ST-GCN)
        # are never invoked in CLIP.forward, so they are not implemented here.

        # Pre-build + pre-pad the per-modality chains ONCE at init (no per-call
        # re-padding, weights reused as-is by every forward).
        self._img_chain = self._build_chain(self.mlp_image_p, self.mlp_image_r,
                                            self.image_proj)
        self._imu_chain = self._build_chain(self.mlp_imu_p, self.mlp_imu_r,
                                            self.imu_proj)
        self._skel_chain = self._build_chain(self.mlp_skel_p, self.mlp_skel_r,
                                             self.skel_proj)

    def _build_chain(self, base_p, base_r, proj):
        params = list(base_p) + list(self.shared_p)
        relus = list(base_r) + list(self.shared_r)
        if self.step in (1, 2):
            params = params + [proj]
            relus = relus + [False]
        padded = [_pad_linear(w, b) for (w, b) in params]
        out_dim = params[-1][0].shape[1]
        return params, padded, relus, out_dim

    # --- encoders: one pallas_call each, all list items fused row-wise ---

    def encode_image(self, images):
        _, padded, relus, out_dim = self._img_chain
        x = jnp.concatenate([img.astype(jnp.float32) for img in images], 0)
        return fused_mlp_chain(x, padded, relus, out_dim)

    def encode_imu(self, imus):
        _, padded, relus, out_dim = self._imu_chain
        # torch: mlp_imu(imu).squeeze(0) -> shared_mlp -> mean(dim=0).
        # The chain is row-wise, so we concat all items' rows and compute the
        # per-item means inside the same kernel via an averaging matmul.
        xs = [imu.reshape(imu.shape[-2], imu.shape[-1]).astype(jnp.float32)
              for imu in imus]
        lens = [int(v.shape[0]) for v in xs]
        x = jnp.concatenate(xs, 0)
        avg_np = np.zeros((len(xs), sum(lens)), np.float32)
        off = 0
        for i, L in enumerate(lens):
            avg_np[i, off:off + L] = 1.0 / L
            off += L
        return fused_mlp_chain(x, padded, relus, out_dim,
                               avg=jnp.asarray(avg_np))

    def encode_skeleton(self, skeletons):
        _, padded, relus, out_dim = self._skel_chain
        x = jnp.concatenate([sk.astype(jnp.float32) for sk in skeletons], 0)
        return fused_mlp_chain(x, padded, relus, out_dim)

    def forward(self, image, imu_data, skeleton):
        if self.step == 1:
            return {'imu_embed': self.encode_imu(imu_data),
                    'skeleton_embed': self.encode_skeleton(skeleton),
                    'logit_scale': jnp.exp(self.logit_scale)}
        if self.step == 2:
            return {'image_embed': self.encode_image(image),
                    'skeleton_embed': self.encode_skeleton(skeleton),
                    'logit_scale': jnp.exp(self.logit_scale)}
        if self.step == 3:
            return {'image_embed': self.encode_image(image),
                    'imu_embed': self.encode_imu(imu_data),
                    'skeleton_embed': self.encode_skeleton(skeleton),
                    'logit_scale': jnp.exp(self.logit_scale)}


# ---------------------------- pure-JAX reference --------------------------

def _ref_chain(x, params, relus, reduce_mean=False):
    x = x.astype(jnp.float32)
    for (w, b), r in zip(params, relus):
        x = x @ w + b
        if r:
            x = jnp.maximum(x, 0.0)
    if reduce_mean:
        x = jnp.mean(x, axis=0, keepdims=True)
    return x


# --------------------------------- main ------------------------------------

if __name__ == "__main__":
    key = jax.random.PRNGKey(0)
    kparam, kimg, kimu, kskel = jax.random.split(key, 4)

    # Small synthetic config (torch: image feat = 512 from r3d_18, skel = 60).
    embed_dim = 32
    mlp_hidden_dim = 32
    mlp_layers = 2
    image_feat_dim = 48     # small stand-in for r3d_18's 512 features
    mlp_width = 24          # IMU feature width
    skel_feat_dim = 60
    step = 3

    model = CLIPPallas(kparam,
                       embed_dim=embed_dim,
                       image_feat_dim=image_feat_dim,
                       mlp_width=mlp_width,
                       skel_feat_dim=skel_feat_dim,
                       mlp_hidden_dim=mlp_hidden_dim,
                       mlp_layers=mlp_layers,
                       step=step)

    # Inputs mirror the torch forward: lists of per-sample feature tensors.
    img_keys = jax.random.split(kimg, 2)
    images = [jax.random.normal(k, (4, image_feat_dim), jnp.float32)
              for k in img_keys]
    imu_keys = jax.random.split(kimu, 2)
    imus = [jax.random.normal(k, (1, 8, mlp_width), jnp.float32)
            for k in imu_keys]
    skel_keys = jax.random.split(kskel, 2)
    skeletons = [jax.random.normal(k, (4, skel_feat_dim), jnp.float32)
                 for k in skel_keys]

    out = model.forward(images, imus, skeletons)
    out = jax.tree_util.tree_map(jax.block_until_ready, out)

    # Verify against a pure-JAX reference (raw, unpadded weights).
    img_p, _, img_r, _ = model._img_chain
    imu_p, _, imu_r, _ = model._imu_chain
    skel_p, _, skel_r, _ = model._skel_chain
    ref_img = jnp.concatenate([_ref_chain(x, img_p, img_r) for x in images], 0)
    ref_imu = jnp.stack([_ref_chain(x.reshape(x.shape[-2], x.shape[-1]),
                                    imu_p, imu_r, reduce_mean=True)[0]
                         for x in imus], 0)
    ref_skel = jnp.concatenate([_ref_chain(x, skel_p, skel_r)
                                for x in skeletons], 0)

    assert np.allclose(np.asarray(out['image_embed']), np.asarray(ref_img),
                       rtol=1e-4, atol=1e-4)
    assert np.allclose(np.asarray(out['imu_embed']), np.asarray(ref_imu),
                       rtol=1e-4, atol=1e-4)
    assert np.allclose(np.asarray(out['skeleton_embed']), np.asarray(ref_skel),
                       rtol=1e-4, atol=1e-4)
    assert out['image_embed'].shape == (8, embed_dim)
    assert out['imu_embed'].shape == (2, embed_dim)
    assert out['skeleton_embed'].shape == (8, embed_dim)

    print("KERNEL_OK")
</pallas_src>

<mosaic_0001>
module attributes {stable_mosaic.version = 11 : i64} {
  func.func @kernel(%arg0: i32, %arg1: memref<8x128xf32, #tpu.memory_space<vmem>>, %arg2: memref<128x128xf32, #tpu.memory_space<vmem>>, %arg3: memref<1x128xf32, #tpu.memory_space<vmem>>, %arg4: memref<128x128xf32, #tpu.memory_space<vmem>>, %arg5: memref<1x128xf32, #tpu.memory_space<vmem>>, %arg6: memref<128x128xf32, #tpu.memory_space<vmem>>, %arg7: memref<1x128xf32, #tpu.memory_space<vmem>>, %arg8: memref<128x128xf32, #tpu.memory_space<vmem>>, %arg9: memref<1x128xf32, #tpu.memory_space<vmem>>, %arg10: memref<128x128xf32, #tpu.memory_space<vmem>>, %arg11: memref<1x128xf32, #tpu.memory_space<vmem>>, %arg12: memref<8x128xf32, #tpu.memory_space<vmem>>) attributes {dimension_semantics = [#tpu.dimension_semantics<parallel>], iteration_bounds = array<i64: 1>, scalar_prefetch = 0 : i64, scratch_operands = 0 : i64, tpu.core_type = #tpu.core_type<tc>, window_params = [{transform_indices = @transform_0, window_bounds = array<i64: 8, 128>}, {pipeline_mode = #tpu.pipeline_mode<synchronous>, transform_indices = @transform_1, window_bounds = array<i64: 128, 128>}, {pipeline_mode = #tpu.pipeline_mode<synchronous>, transform_indices = @transform_2, window_bounds = array<i64: 1, 128>}, {pipeline_mode = #tpu.pipeline_mode<synchronous>, transform_indices = @transform_3, window_bounds = array<i64: 128, 128>}, {pipeline_mode = #tpu.pipeline_mode<synchronous>, transform_indices = @transform_4, window_bounds = array<i64: 1, 128>}, {pipeline_mode = #tpu.pipeline_mode<synchronous>, transform_indices = @transform_5, window_bounds = array<i64: 128, 128>}, {pipeline_mode = #tpu.pipeline_mode<synchronous>, transform_indices = @transform_6, window_bounds = array<i64: 1, 128>}, {pipeline_mode = #tpu.pipeline_mode<synchronous>, transform_indices = @transform_7, window_bounds = array<i64: 128, 128>}, {pipeline_mode = #tpu.pipeline_mode<synchronous>, transform_indices = @transform_8, window_bounds = array<i64: 1, 128>}, {pipeline_mode = #tpu.pipeline_mode<synchronous>, transform_indices = @transform_9, window_bounds = array<i64: 128, 128>}, {pipeline_mode = #tpu.pipeline_mode<synchronous>, transform_indices = @transform_10, window_bounds = array<i64: 1, 128>}, {transform_indices = @transform_11, window_bounds = array<i64: 8, 128>}]} {
    %c0 = arith.constant 0 : index
    %c0_0 = arith.constant 0 : index
    %0 = vector.load %arg1[%c0, %c0_0] : memref<8x128xf32, #tpu.memory_space<vmem>>, vector<8x128xf32>
    %c0_1 = arith.constant 0 : index
    %c0_2 = arith.constant 0 : index
    %1 = vector.load %arg2[%c0_1, %c0_2] : memref<128x128xf32, #tpu.memory_space<vmem>>, vector<128x128xf32>
    %c0_3 = arith.constant 0 : index
    %c0_4 = arith.constant 0 : index
    %2 = vector.load %arg3[%c0_3, %c0_4] : memref<1x128xf32, #tpu.memory_space<vmem>>, vector<1x128xf32>
    %cst = arith.constant dense<0.000000e+00> : vector<8x128xf32>
    %3 = tpu.matmul %0, %1, %cst {dimension_numbers = #tpu.dot_dimension_numbers<[1], [0], [0], [1], [0, 0, 1, 1], [], []>} : vector<8x128xf32>, vector<128x128xf32>, vector<8x128xf32> -> vector<8x128xf32>
    %4 = vector.broadcast %2 : vector<1x128xf32> to vector<8x128xf32>
    %5 = arith.addf %3, %4 : vector<8x128xf32>
    %cst_5 = arith.constant 0.000000e+00 : f32
    %6 = vector.broadcast %cst_5 : f32 to vector<8x128xf32>
    %7 = arith.maximumf %5, %6 : vector<8x128xf32>
    %c0_6 = arith.constant 0 : index
    %c0_7 = arith.constant 0 : index
    %8 = vector.load %arg4[%c0_6, %c0_7] : memref<128x128xf32, #tpu.memory_space<vmem>>, vector<128x128xf32>
    %c0_8 = arith.constant 0 : index
    %c0_9 = arith.constant 0 : index
    %9 = vector.load %arg5[%c0_8, %c0_9] : memref<1x128xf32, #tpu.memory_space<vmem>>, vector<1x128xf32>
    %cst_10 = arith.constant dense<0.000000e+00> : vector<8x128xf32>
    %10 = tpu.matmul %7, %8, %cst_10 {dimension_numbers = #tpu.dot_dimension_numbers<[1], [0], [0], [1], [0, 0, 1, 1], [], []>} : vector<8x128xf32>, vector<128x128xf32>, vector<8x128xf32> -> vector<8x128xf32>
    %11 = vector.broadcast %9 : vector<1x128xf32> to vector<8x128xf32>
    %12 = arith.addf %10, %11 : vector<8x128xf32>
    %cst_11 = arith.constant 0.000000e+00 : f32
    %13 = vector.broadcast %cst_11 : f32 to vector<8x128xf32>
    %14 = arith.maximumf %12, %13 : vector<8x128xf32>
    %c0_12 = arith.constant 0 : index
    %c0_13 = arith.constant 0 : index
    %15 = vector.load %arg6[%c0_12, %c0_13] : memref<128x128xf32, #tpu.memory_space<vmem>>, vector<128x128xf32>
    %c0_14 = arith.constant 0 : index
    %c0_15 = arith.constant 0 : index
    %16 = vector.load %arg7[%c0_14, %c0_15] : memref<1x128xf32, #tpu.memory_space<vmem>>, vector<1x128xf32>
    %cst_16 = arith.constant dense<0.000000e+00> : vector<8x128xf32>
    %17 = tpu.matmul %14, %15, %cst_16 {dimension_numbers = #tpu.dot_dimension_numbers<[1], [0], [0], [1], [0, 0, 1, 1], [], []>} : vector<8x128xf32>, vector<128x128xf32>, vector<8x128xf32> -> vector<8x128xf32>
    %18 = vector.broadcast %16 : vector<1x128xf32> to vector<8x128xf32>
    %19 = arith.addf %17, %18 : vector<8x128xf32>
    %c0_17 = arith.constant 0 : index
    %c0_18 = arith.constant 0 : index
    %20 = vector.load %arg8[%c0_17, %c0_18] : memref<128x128xf32, #tpu.memory_space<vmem>>, vector<128x128xf32>
    %c0_19 = arith.constant 0 : index
    %c0_20 = arith.constant 0 : index
    %21 = vector.load %arg9[%c0_19, %c0_20] : memref<1x128xf32, #tpu.memory_space<vmem>>, vector<1x128xf32>
    %cst_21 = arith.constant dense<0.000000e+00> : vector<8x128xf32>
    %22 = tpu.matmul %19, %20, %cst_21 {dimension_numbers = #tpu.dot_dimension_numbers<[1], [0], [0], [1], [0, 0, 1, 1], [], []>} : vector<8x128xf32>, vector<128x128xf32>, vector<8x128xf32> -> vector<8x128xf32>
    %23 = vector.broadcast %21 : vector<1x128xf32> to vector<8x128xf32>
    %24 = arith.addf %22, %23 : vector<8x128xf32>
    %cst_22 = arith.constant 0.000000e+00 : f32
    %25 = vector.broadcast %cst_22 : f32 to vector<8x128xf32>
    %26 = arith.maximumf %24, %25 : vector<8x128xf32>
    %c0_23 = arith.constant 0 : index
    %c0_24 = arith.constant 0 : index
    %27 = vector.load %arg10[%c0_23, %c0_24] : memref<128x128xf32, #tpu.memory_space<vmem>>, vector<128x128xf32>
    %c0_25 = arith.constant 0 : index
    %c0_26 = arith.constant 0 : index
    %28 = vector.load %arg11[%c0_25, %c0_26] : memref<1x128xf32, #tpu.memory_space<vmem>>, vector<1x128xf32>
    %cst_27 = arith.constant dense<0.000000e+00> : vector<8x128xf32>
    %29 = tpu.matmul %26, %27, %cst_27 {dimension_numbers = #tpu.dot_dimension_numbers<[1], [0], [0], [1], [0, 0, 1, 1], [], []>} : vector<8x128xf32>, vector<128x128xf32>, vector<8x128xf32> -> vector<8x128xf32>
    %30 = vector.broadcast %28 : vector<1x128xf32> to vector<8x128xf32>
    %31 = arith.addf %29, %30 : vector<8x128xf32>
    %c0_28 = arith.constant 0 : index
    %c0_29 = arith.constant 0 : index
    %32 = vector.load %arg12[%c0_28, %c0_29] : memref<8x128xf32, #tpu.memory_space<vmem>>, vector<8x128xf32>
    tpu.vector_store %arg12[%c0_28, %c0_29], %31 {strides = array<i32>} : memref<8x128xf32, #tpu.memory_space<vmem>>, vector<8x128xf32>,
    return
  }
  func.func @transform_0(%arg0: i32) -> (i32, i32) {
    %c0_i32 = arith.constant 0 : i32
    %c0_i32_0 = arith.constant 0 : i32
    return %arg0, %c0_i32 : i32, i32
  }
  func.func @transform_1(%arg0: i32) -> (i32, i32) {
    %c0_i32 = arith.constant 0 : i32
    %c0_i32_0 = arith.constant 0 : i32
    %c0_i32_1 = arith.constant 0 : i32
    return %c0_i32, %c0_i32_0 : i32, i32
  }
  func.func @transform_2(%arg0: i32) -> (i32, i32) {
    %c0_i32 = arith.constant 0 : i32
    %c0_i32_0 = arith.constant 0 : i32
    %c0_i32_1 = arith.constant 0 : i32
    return %c0_i32, %c0_i32_0 : i32, i32
  }
  func.func @transform_3(%arg0: i32) -> (i32, i32) {
    %c0_i32 = arith.constant 0 : i32
    %c0_i32_0 = arith.constant 0 : i32
    %c0_i32_1 = arith.constant 0 : i32
    return %c0_i32, %c0_i32_0 : i32, i32
  }
  func.func @transform_4(%arg0: i32) -> (i32, i32) {
    %c0_i32 = arith.constant 0 : i32
    %c0_i32_0 = arith.constant 0 : i32
    %c0_i32_1 = arith.constant 0 : i32
    return %c0_i32, %c0_i32_0 : i32, i32
  }
  func.func @transform_5(%arg0: i32) -> (i32, i32) {
    %c0_i32 = arith.constant 0 : i32
    %c0_i32_0 = arith.constant 0 : i32
    %c0_i32_1 = arith.constant 0 : i32
    return %c0_i32, %c0_i32_0 : i32, i32
  }
  func.func @transform_6(%arg0: i32) -> (i32, i32) {
    %c0_i32 = arith.constant 0 : i32
    %c0_i32_0 = arith.constant 0 : i32
    %c0_i32_1 = arith.constant 0 : i32
    return %c0_i32, %c0_i32_0 : i32, i32
  }
  func.func @transform_7(%arg0: i32) -> (i32, i32) {
    %c0_i32 = arith.constant 0 : i32
    %c0_i32_0 = arith.constant 0 : i32
    %c0_i32_1 = arith.constant 0 : i32
    return %c0_i32, %c0_i32_0 : i32, i32
  }
  func.func @transform_8(%arg0: i32) -> (i32, i32) {
    %c0_i32 = arith.constant 0 : i32
    %c0_i32_0 = arith.constant 0 : i32
    %c0_i32_1 = arith.constant 0 : i32
    return %c0_i32, %c0_i32_0 : i32, i32
  }
  func.func @transform_9(%arg0: i32) -> (i32, i32) {
    %c0_i32 = arith.constant 0 : i32
    %c0_i32_0 = arith.constant 0 : i32
    %c0_i32_1 = arith.constant 0 : i32
    return %c0_i32, %c0_i32_0 : i32, i32
  }
  func.func @transform_10(%arg0: i32) -> (i32, i32) {
    %c0_i32 = arith.constant 0 : i32
    %c0_i32_0 = arith.constant 0 : i32
    %c0_i32_1 = arith.constant 0 : i32
    return %c0_i32, %c0_i32_0 : i32, i32
  }
  func.func @transform_11(%arg0: i32) -> (i32, i32) {
    %c0_i32 = arith.constant 0 : i32
    %c0_i32_0 = arith.constant 0 : i32
    return %arg0, %c0_i32 : i32, i32
  }
}

</mosaic_0001>

<bundles_post_ra>
// kernel: tpu_custom_call.1
= control target key start
LH: loop header
LB: loop body
LE: loop exit
PB: predicated region body
PF: predicated region fallthrough
CT: control target
= control target key end

     0   :  { %16 = vsyncpa [#allocation3], 0  ;;  %s668_s0 = inlined_call_operand.hbm [shape: f32[8,128], index: 0, kind: input, shape index: {}]   ;;  %s669_s1 = inlined_call_operand.hbm [shape: f32[128,128], index: 1, kind: input, shape index: {}]   ;;  %s670_s2 = inlined_call_operand.vmem [shape: f32[1,128], index: 2, kind: input, shape index: {}]   ;;  %s671_s3 = inlined_call_operand.hbm [shape: f32[128,128], index: 3, kind: input, shape index: {}]   ;;  %s672_s4 = inlined_call_operand.vmem [shape: f32[1,128], index: 4, kind: input, shape index: {}]   ;;  %s673_s5 = inlined_call_operand.hbm [shape: f32[128,128], index: 5, kind: input, shape index: {}]   ;;  %s674_s6 = inlined_call_operand.vmem [shape: f32[1,128], index: 6, kind: input, shape index: {}]   ;;  %s675_s7 = inlined_call_operand.hbm [shape: f32[128,128], index: 7, kind: input, shape index: {}]   ;;  %s676_s8 = inlined_call_operand.vmem [shape: f32[1,128], index: 8, kind: input, shape index: {}]   ;;  %s677_s9 = inlined_call_operand.hbm [shape: f32[128,128], index: 9, kind: input, shape index: {}]   ;;  %s678_s10 = inlined_call_operand.vmem [shape: f32[1,128], index: 10, kind: input, shape index: {}]   ;;  %s679_s11 = inlined_call_operand.hbm [shape: f32[8,128], index: 11, kind: output, shape index: {}]  }
   0x1   :  { %17 = vsyncpa [#allocation6], 0 }
   0x2   :  { %18 = vsyncpa [#allocation9], 0 }
   0x3   :  { %19 = vsyncpa [#allocation12], 0  ;;  %s36_s19 = sshll.u32 %s669_s1, 4  ;;  %s37_s19 = int_to_ptr.hbm [resolvable:$true] %s36_s19 }
   0x4   :  { %20 = vsyncpa [#allocation4], 0  ;;  %s548_s20 = smov [#allocation5]   ;;  %s66_s24 = sshll.u32 %s673_s5, 4  ;;  %s67_s24 = int_to_ptr.hbm [resolvable:$true] %s66_s24 }
   0x5   :  { %s38_s21 = sshll.u32 %s548_s20, 4  ;;  %s549_s25 = smov 128   ;;  %s39_s21 = int_to_ptr.vmem [resolvable:$true] %s38_s21 }
   0x6   :  { %s550_s26 = smov 8   ;;  %s551_s27 = smov [#allocation8]  }
   0x7   :  { %44 = dma.hbm_to_vmem [thread:$0]  %s37_s19, 2048, %s39_s21, [#allocation6], %s549_s25, %s549_s25, %s550_s26  }
   0x8   :  { %s68_s28 = sshll.u32 %s551_s27, 4  ;;  %s26_s30 = sshll.u32 %s668_s0, 4  ;;  %s69_s28 = int_to_ptr.vmem [resolvable:$true] %s68_s28  ;;  %s27_s30 = int_to_ptr.hbm [resolvable:$true] %s26_s30 }
   0x9   :  { %74 = dma.hbm_to_vmem [thread:$0]  %s67_s24, 2048, %s69_s28, [#allocation9], %s549_s25, %s549_s25, %s550_s26  }
   0xa   :  { %s51_s13 = sshll.u32 %s671_s3, 4  ;;  %s552_s14 = smov [#allocation2]   ;;  %s52_s13 = int_to_ptr.hbm [resolvable:$true] %s51_s13 }
   0xb   :  { %s28_s15 = sshll.u32 %s552_s14, 4  ;;  %s553_s16 = smov [#allocation7]   ;;  %s29_s15 = int_to_ptr.vmem [resolvable:$true] %s28_s15 }
   0xc   :  { %31 = dma.hbm_to_vmem [thread:$0]  %s27_s30, 128, %s29_s15, [#allocation3]  }
   0xd   :  { %s53_s17 = sshll.u32 %s553_s16, 4  ;;  %s81_s0 = sshll.u32 %s675_s7, 4  ;;  %s54_s17 = int_to_ptr.vmem [resolvable:$true] %s53_s17  ;;  %s82_s0 = int_to_ptr.hbm [resolvable:$true] %s81_s0 }
   0xe   :  { %59 = dma.hbm_to_vmem [thread:$0]  %s52_s13, 2048, %s54_s17, [#allocation6], %s549_s25, %s549_s25, %s550_s26  }
   0xf   :  { %s96_s3 = sshll.u32 %s677_s9, 4  ;;  %s554_s22 = smov [#allocation10]   ;;  %s97_s3 = int_to_ptr.hbm [resolvable:$true] %s96_s3 }
  0x10   :  { %s83_s23 = sshll.u32 %s554_s22, 4  ;;  %s555_s24 = smov [#allocation11]   ;;  %s84_s23 = int_to_ptr.vmem [resolvable:$true] %s83_s23 }
  0x11   :  { %89 = dma.hbm_to_vmem [thread:$0]  %s82_s0, 2048, %s84_s23, [#allocation9], %s549_s25, %s549_s25, %s550_s26  }
  0x12   :  { %s98_s7 = sshll.u32 %s555_s24, 4  ;;  %s99_s7 = int_to_ptr.vmem [resolvable:$true] %s98_s7 }
  0x13   :  { %104 = dma.hbm_to_vmem [thread:$0]  %s97_s3, 2048, %s99_s7, [#allocation12], %s549_s25, %s549_s25, %s550_s26  }
  0x14   :  { %538 = dma.done.wait [#allocation3], 128  }
  0x15   :  { %539 = vsyncadd [#allocation3], 4294967168 }
  0x16   :  { %540 = dma.done.wait [#allocation6], 4096  }
  0x17   :  { %541 = vsyncadd [#allocation6], 4294963200 }
  0x18   :  { %542 = dma.done.wait [#allocation9], 4096  }
  0x19   :  { %543 = vsyncadd [#allocation9], 4294963200 }
  0x1a   :  { %544 = dma.done.wait [#allocation12], 2048  }
  0x1b   :  { %545 = vsyncadd [#allocation12], 4294965248  ;;  %v147_v0 = vld [vmem:[#allocation5 + $0x78] sm:$0xff]  ;;  %v146_v1 = vld [vmem:[#allocation5 + $0x70] sm:$0xff]  ;;  %s343_s14 = sshll.u32 %s679_s11, 4  ;;  %s344_s14 = int_to_ptr.hbm [resolvable:$true] %s343_s14 }
  0x1c   :  { %152 = vmatpush.msra.mxu0 %v147_v0  ;;  %v145_v2 = vld [vmem:[#allocation5 + $0x68] sm:$0xff]  ;;  %v144_v3 = vld [vmem:[#allocation5 + $0x60] sm:$0xff]  ;;  %v188_v4 = vld [vmem:[#allocation7 + $0x78] sm:$0xff] }
  0x1d   :  { %v143_v5 = vld [vmem:[#allocation5 + $0x58] sm:$0xff]  ;;  %193 = vmatpush.msra.mxu1 %v188_v4  ;;  %v187_v6 = vld [vmem:[#allocation7 + $0x70] sm:$0xff]  ;;  %v186_v7 = vld [vmem:[#allocation7 + $0x68] sm:$0xff] }
  0x1e   :  { %153 = vmatpush.msra.mxu0 %v146_v1  ;;  %v142_v8 = vld [vmem:[#allocation5 + $0x50] sm:$0xff]  ;;  %v141_v9 = vld [vmem:[#allocation5 + $0x48] sm:$0xff]  ;;  %v185_v10 = vld [vmem:[#allocation7 + $0x60] sm:$0xff] }
  0x1f   :  { %194 = vmatpush.msra.mxu1 %v187_v6  ;;  %v184_v11 = vld [vmem:[#allocation7 + $0x58] sm:$0xff]  ;;  %v140_v12 = vld [vmem:[#allocation5 + $0x40] sm:$0xff]  ;;  %v183_v13 = vld [vmem:[#allocation7 + $0x50] sm:$0xff] }
  0x20   :  { %154 = vmatpush.msra.mxu0 %v145_v2  ;;  %v139_v14 = vld [vmem:[#allocation5 + $0x38] sm:$0xff]  ;;  %v182_v15 = vld [vmem:[#allocation7 + $0x48] sm:$0xff]  ;;  %v138_v16 = vld [vmem:[#allocation5 + $0x30] sm:$0xff] }
  0x21   :  { %195 = vmatpush.msra.mxu1 %v186_v7  ;;  %v181_v17 = vld [vmem:[#allocation7 + $0x40] sm:$0xff]  ;;  %v137_v18 = vld [vmem:[#allocation5 + $0x28] sm:$0xff]  ;;  %v180_v19 = vld [vmem:[#allocation7 + $0x38] sm:$0xff] }
  0x22   :  { %155 = vmatpush.msra.mxu0 %v144_v3  ;;  %v136_v20 = vld [vmem:[#allocation5 + $0x20] sm:$0xff]  ;;  %v179_v21 = vld [vmem:[#allocation7 + $0x30] sm:$0xff]  ;;  %v135_v22 = vld [vmem:[#allocation5 + $0x18] sm:$0xff] }
  0x23   :  { %196 = vmatpush.msra.mxu1 %v185_v10  ;;  %v178_v23 = vld [vmem:[#allocation7 + $0x28] sm:$0xff]  ;;  %v134_v24 = vld [vmem:[#allocation5 + $0x10] sm:$0xff]  ;;  %v177_v25 = vld [vmem:[#allocation7 + $0x20] sm:$0xff] }
  0x24   :  { %156 = vmatpush.msra.mxu0 %v143_v5  ;;  %v133_v26 = vld [vmem:[#allocation5 + $0x8] sm:$0xff]  ;;  %v176_v27 = vld [vmem:[#allocation7 + $0x18] sm:$0xff]  ;;  %v132_v28 = vld [vmem:[#allocation5] sm:$0xff] }
  0x25   :  { %197 = vmatpush.msra.mxu1 %v184_v11  ;;  %v131_v29 = vld [vmem:[#allocation2] sm:$0xff]  ;;  %v175_v30 = vld [vmem:[#allocation7 + $0x10] sm:$0xff]  ;;  %v174_v31 = vld [vmem:[#allocation7 + $0x8] sm:$0xff] }
  0x26   :  { %157 = vmatpush.msra.mxu0 %v142_v8  ;;  %v173_v32 = vld [vmem:[#allocation7] sm:$0xff]  ;;  %v229_v33 = vld [vmem:[#allocation8 + $0x78] sm:$0xff]  ;;  %v228_v34 = vld [vmem:[#allocation8 + $0x70] sm:$0xff] }
  0x27   :  { %198 = vmatpush.msra.mxu1 %v183_v13  ;;  %234 = vmatpush.msra.mxu2 %v229_v33  ;;  %v227_v35 = vld [vmem:[#allocation8 + $0x68] sm:$0xff]  ;;  %v226_v36 = vld [vmem:[#allocation8 + $0x60] sm:$0xff]  ;;  %v225_v37 = vld [vmem:[#allocation8 + $0x58] sm:$0xff] }
  0x28   :  { %158 = vmatpush.msra.mxu0 %v141_v9  ;;  %v224_v38 = vld [vmem:[#allocation8 + $0x50] sm:$0xff]  ;;  %v223_v39 = vld [vmem:[#allocation8 + $0x48] sm:$0xff]  ;;  %v222_v40 = vld [vmem:[#allocation8 + $0x40] sm:$0xff] }
  0x29   :  { %199 = vmatpush.msra.mxu1 %v182_v15  ;;  %235 = vmatpush.msra.mxu2 %v228_v34  ;;  %v221_v41 = vld [vmem:[#allocation8 + $0x38] sm:$0xff]  ;;  %v220_v42 = vld [vmem:[#allocation8 + $0x30] sm:$0xff]  ;;  %v219_v43 = vld [vmem:[#allocation8 + $0x28] sm:$0xff] }
  0x2a   :  { %159 = vmatpush.msra.mxu0 %v140_v12  ;;  %v218_v44 = vld [vmem:[#allocation8 + $0x20] sm:$0xff]  ;;  %v217_v45 = vld [vmem:[#allocation8 + $0x18] sm:$0xff]  ;;  %v216_v50 = vld [vmem:[#allocation8 + $0x10] sm:$0xff] }
  0x2b   :  { %200 = vmatpush.msra.mxu1 %v181_v17  ;;  %236 = vmatpush.msra.mxu2 %v227_v35  ;;  %v365_v46 = vld [vmem:[%s670_s2] ss:$0 sm:$0xff]  ;;  %v215_v51 = vld [vmem:[#allocation8 + $0x8] sm:$0xff]  ;;  %v214_v52 = vld [vmem:[#allocation8] sm:$0xff] }
  0x2c   :  { %160 = vmatpush.msra.mxu0 %v139_v14  ;;  %v269_v53 = vld [vmem:[#allocation10 + $0x78] sm:$0xff]  ;;  %v268_v54 = vld [vmem:[#allocation10 + $0x70] sm:$0xff]  ;;  %v267_v55 = vld [vmem:[#allocation10 + $0x68] sm:$0xff] }
  0x2d   :  { %201 = vmatpush.msra.mxu1 %v180_v19  ;;  %237 = vmatpush.msra.mxu2 %v226_v36  ;;  %v266_v56 = vld [vmem:[#allocation10 + $0x60] sm:$0xff]  ;;  %v265_v57 = vld [vmem:[#allocation10 + $0x58] sm:$0xff]  ;;  %v264_v58 = vld [vmem:[#allocation10 + $0x50] sm:$0xff] }
  0x2e   :  { %161 = vmatpush.msra.mxu0 %v138_v16  ;;  %274 = vmatpush.msra.mxu3 %v269_v53  ;;  %v263_v59 = vld [vmem:[#allocation10 + $0x48] sm:$0xff]  ;;  %v262_v60 = vld [vmem:[#allocation10 + $0x40] sm:$0xff]  ;;  %v261_v61 = vld [vmem:[#allocation10 + $0x38] sm:$0xff] }
  0x2f   :  { %202 = vmatpush.msra.mxu1 %v179_v21  ;;  %238 = vmatpush.msra.mxu2 %v225_v37  ;;  %v260_v62 = vld [vmem:[#allocation10 + $0x30] sm:$0xff]  ;;  %v259_v63 = vld [vmem:[#allocation10 + $0x28] sm:$0xff]  ;;  %v258_v0 = vld [vmem:[#allocation10 + $0x20] sm:$0xff] }
  0x30   :  { %162 = vmatpush.msra.mxu0 %v137_v18  ;;  %275 = vmatpush.msra.mxu3 %v268_v54  ;;  %v257_v1 = vld [vmem:[#allocation10 + $0x18] sm:$0xff]  ;;  %v256_v3 = vld [vmem:[#allocation10 + $0x10] sm:$0xff]  ;;  %v255_v7 = vld [vmem:[#allocation10 + $0x8] sm:$0xff] }
  0x31   :  { %203 = vmatpush.msra.mxu1 %v178_v23  ;;  %239 = vmatpush.msra.mxu2 %v224_v38  ;;  %v366_v2 = vld [vmem:[%s672_s4] ss:$0 sm:$0xff]  ;;  %v254_v8 = vld [vmem:[#allocation10] sm:$0xff]  ;;  %v309_v10 = vld [vmem:[#allocation11 + $0x70] sm:$0xff] }
  0x32   :  { %163 = vmatpush.msra.mxu0 %v136_v20  ;;  %276 = vmatpush.msra.mxu3 %v267_v55  ;;  %v310_v9 = vld [vmem:[#allocation11 + $0x78] sm:$0xff]  ;;  %v308_v11 = vld [vmem:[#allocation11 + $0x68] sm:$0xff]  ;;  %v307_v12 = vld [vmem:[#allocation11 + $0x60] sm:$0xff] }
  0x33   :  { %204 = vmatpush.msra.mxu1 %v177_v25  ;;  %240 = vmatpush.msra.mxu2 %v223_v39  ;;  %v306_v13 = vld [vmem:[#allocation11 + $0x58] sm:$0xff]  ;;  %v305_v14 = vld [vmem:[#allocation11 + $0x50] sm:$0xff]  ;;  %v304_v15 = vld [vmem:[#allocation11 + $0x48] sm:$0xff] }
  0x34   :  { %164 = vmatpush.msra.mxu0 %v135_v22  ;;  %277 = vmatpush.msra.mxu3 %v266_v56  ;;  %v303_v16 = vld [vmem:[#allocation11 + $0x40] sm:$0xff]  ;;  %v302_v17 = vld [vmem:[#allocation11 + $0x38] sm:$0xff]  ;;  %v301_v18 = vld [vmem:[#allocation11 + $0x30] sm:$0xff] }
  0x35   :  { %205 = vmatpush.msra.mxu1 %v176_v27  ;;  %241 = vmatpush.msra.mxu2 %v222_v40  ;;  %v300_v19 = vld [vmem:[#allocation11 + $0x28] sm:$0xff]  ;;  %v299_v20 = vld [vmem:[#allocation11 + $0x20] sm:$0xff]  ;;  %v298_v21 = vld [vmem:[#allocation11 + $0x18] sm:$0xff] }
  0x36   :  { %165 = vmatpush.msra.mxu0 %v134_v24  ;;  %278 = vmatpush.msra.mxu3 %v265_v57  ;;  %v367_v22 = vld [vmem:[%s674_s6] ss:$0 sm:$0xff]  ;;  %v297_v25 = vld [vmem:[#allocation11 + $0x10] sm:$0xff]  ;;  %v295_v27 = vld [vmem:[#allocation11] sm:$0xff]  ;;  %s556_s6 = smov [#allocation13]  }
  0x37   :  { %206 = vmatpush.msra.mxu1 %v175_v30  ;;  %242 = vmatpush.msra.mxu2 %v221_v41  ;;  %s341_s5 = sshll.u32 %s556_s6, 4  ;;  %s342_s5 = int_to_ptr.vmem [resolvable:$true] %s341_s5 }
  0x38   :  { %166 = vmatpush.msra.mxu0 %v133_v26  ;;  %279 = vmatpush.msra.mxu3 %v264_v58  ;;  %v296_v26 = vld [vmem:[#allocation11 + $0x8] sm:$0xff] }
  0x39   :  { %207 = vmatpush.msra.mxu1 %v174_v31  ;;  %243 = vmatpush.msra.mxu2 %v220_v42 }
  0x3a   :  { %167 = vmatpush.msra.mxu0 %v132_v28  ;;  %280 = vmatpush.msra.mxu3 %v263_v59  ;;  %v368_v28 = vld [vmem:[%s676_s8] ss:$0 sm:$0xff] }
  0x3b   :  { %168 = vmatmul.f32.vlgmr.msra.gmra.mxu0 %v131_v29  ;;  %208 = vmatpush.msra.mxu1 %v173_v32  ;;  %v369_v32 = vld [vmem:[%s678_s10] ss:$0 sm:$0xff] }
  0x3c   :  { %244 = vmatpush.msra.mxu2 %v219_v43  ;;  %281 = vmatpush.msra.mxu3 %v262_v60 }
  0x3d   :  { %315 = vmatpush.msrb.mxu0 %v310_v9 }
  0x3e   :  { %245 = vmatpush.msra.mxu2 %v218_v44  ;;  %282 = vmatpush.msra.mxu3 %v261_v61 }
  0x3f   :  { %316 = vmatpush.msrb.mxu0 %v309_v10 }
  0x40   :  { %246 = vmatpush.msra.mxu2 %v217_v45  ;;  %283 = vmatpush.msra.mxu3 %v260_v62 }
  0x41   :  { %317 = vmatpush.msrb.mxu0 %v308_v11 }
  0x42   :  { %247 = vmatpush.msra.mxu2 %v216_v50  ;;  %284 = vmatpush.msra.mxu3 %v259_v63 }
  0x43   :  { %318 = vmatpush.msrb.mxu0 %v307_v12 }
  0x44   :  { %248 = vmatpush.msra.mxu2 %v215_v51  ;;  %285 = vmatpush.msra.mxu3 %v258_v0 }
  0x45   :  { %319 = vmatpush.msrb.mxu0 %v306_v13 }
  0x46   :  { %249 = vmatpush.msra.mxu2 %v214_v52  ;;  %286 = vmatpush.msra.mxu3 %v257_v1 }
  0x47   :  { %320 = vmatpush.msrb.mxu0 %v305_v14 }
  0x48   :  { %287 = vmatpush.msra.mxu3 %v256_v3 }
  0x49   :  { %321 = vmatpush.msrb.mxu0 %v304_v15 }
  0x4a   :  { %288 = vmatpush.msra.mxu3 %v255_v7 }
  0x4b   :  { %322 = vmatpush.msrb.mxu0 %v303_v16 }
  0x4c   :  { %289 = vmatpush.msra.mxu3 %v254_v8 }
  0x4d   :  { %323 = vmatpush.msrb.mxu0 %v302_v17 }
  0x4f   :  { %324 = vmatpush.msrb.mxu0 %v301_v18 }
  0x51   :  { %325 = vmatpush.msrb.mxu0 %v300_v19 }
  0x53   :  { %326 = vmatpush.msrb.mxu0 %v299_v20 }
  0x55   :  { %327 = vmatpush.msrb.mxu0 %v298_v21 }
  0x57   :  { %328 = vmatpush.msrb.mxu0 %v297_v25 }
  0x59   :  { %329 = vmatpush.msrb.mxu0 %v296_v26 }
  0x5b   :  { %330 = vmatpush.msrb.mxu0 %v295_v27 }
  0xb8   :  { %v169_v47 = vpop.f32.mrf.mxu0 }
  0xb9   :  { %v170_v48 = vadd.f32 %v365_v46, %v169_v47 }
  0xbb   :  { %v172_v49 = vmax.f32 %v170_v48, 0.0 }
  0xbd   :  { %209 = vmatmul.f32.vlgmr.msra.gmra.mxu1 %v172_v49 }
 0x13a   :  { %v210_v4 = vpop.f32.mrf.mxu1 }
 0x13b   :  { %v211_v5 = vadd.f32 %v366_v2, %v210_v4 }
 0x13d   :  { %v213_v6 = vmax.f32 %v211_v5, 0.0 }
 0x13f   :  { %250 = vmatmul.f32.vlgmr.msra.gmra.mxu2 %v213_v6 }
 0x1c2   :  { %v251_v23 = vpop.f32.mrf.mxu2 }
 0x1c3   :  { %v252_v24 = vadd.f32 %v367_v22, %v251_v23 }
 0x1c5   :  { %290 = vmatmul.f32.vlgmr.msra.gmra.mxu3 %v252_v24 }
 0x248   :  { %v291_v29 = vpop.f32.mrf.mxu3 }
 0x249   :  { %v292_v30 = vadd.f32 %v368_v28, %v291_v29 }
 0x24b   :  { %v294_v31 = vmax.f32 %v292_v30, 0.0 }
 0x24d   :  { %331 = vmatmul.f32.vlgmr.msrb.gmra.mxu0 %v294_v31 }
 0x2ca   :  { %v332_v33 = vpop.f32.mrf.mxu0 }
 0x2cb   :  { %v333_v34 = vadd.f32 %v369_v32, %v332_v33 }
 0x2cd   :  { %335 = vst [vmem:[#allocation13] sm:$0xff] %v333_v34 }
 0x2ce   :  { %346 = dma.vmem_to_hbm [thread:$0]  %s342_s5, 128, %s344_s14, [#allocation4]  }
 0x2cf   :  { %546 = dma.done.wait [#allocation4], 128  }
 0x2d0   :  { %547 = vsyncadd [#allocation4], 4294967168 }
 0x2d1   :  { %351 = vsyncpa [#allocation3], 1 }
 0x2d2   :  { %352 = vsyncpa [#allocation6], 1 }
 0x2d3   :  { %353 = vsyncpa [#allocation9], 1 }
 0x2d4   :  { %354 = vsyncpa [#allocation12], 1 }
 0x2d5   :  { %355 = vsyncpa [#allocation4], 1 }

</bundles_post_ra>
